<compile_context>
chip_gen: v7x
topology: tpu7x:2x2x1
jax: 0.10.0
libtpu: 0.0.40
codegen_flags: <defaults>
</compile_context>

<pallas_src>
import jax
import jax.numpy as jnp
from jax.experimental import pallas as pl
from jax.experimental.pallas import tpu as pltpu

IN_F = 28 * 28   # 784
HID = 128
NCLS = 10
F_PAD = 896      # 7 * 128
C_PAD = 128      # lane-dense output width


def net_kernel(x_ref, w1_ref, b1_ref, w2_ref, b2_ref, o_ref):
    # x_ref: (TB, 896) bf16, w1_ref: (896, 128) bf16, b1_ref: (1, 128) f32
    # w2_ref: (128, 128) bf16, b2_ref: (1, 128) f32, o_ref: (TB, 128) f32
    x = x_ref[...]

    # fc1 + relu : bf16 MXU matmul, f32 accumulate, f32 bias/relu
    h = jnp.dot(x, w1_ref[...], preferred_element_type=jnp.float32)
    h = jnp.maximum(h + b1_ref[...], 0.0)

    # fc2 : bf16 MXU matmul, f32 accumulate, f32 bias
    logits = jnp.dot(h.astype(jnp.bfloat16), w2_ref[...],
                     preferred_element_type=jnp.float32) + b2_ref[...]

    # softmax over classes (padded lanes hold -1e30 -> exp underflows to 0)
    m = jnp.max(logits, axis=1, keepdims=True)
    e = jnp.exp(logits - m)
    s = jnp.sum(e, axis=1, keepdims=True)
    o_ref[...] = (e * pl.reciprocal(s, approx=True)).astype(o_ref.dtype)


def _round_up(x, m):
    return ((x + m - 1) // m) * m


def _pick_tile_b(B):
    # Large batches: MXU-row-sized tiles, keep grid >= 2 for megacore sharding
    # (v7x has 2 TCs).  x tile at 1024 rows is ~1.75 MiB bf16 (double-buffered
    # ~3.5 MiB) -> comfortably within v5e's 16 MiB scoped-VMEM default and
    # v7x's 64 MiB physical VMEM.  Small batches: one sublane-aligned tile.
    if B >= 2048:
        return 1024
    if B >= 512:
        return 256
    return _round_up(B, 8)


def net_forward(x_nchw, w1, b1, w2, b2, *, tile_b=None):
    """x_nchw: (B, 1, 28, 28) float32  ->  (B, 10) softmax probabilities."""
    B = x_nchw.shape[0]

    # ---- glue: flatten, cast matmul operands to bf16, pad to aligned shapes ----
    x2d = x_nchw.reshape(B, IN_F).astype(jnp.bfloat16)
    x2d = jnp.pad(x2d, ((0, 0), (0, F_PAD - IN_F)))                 # zero-pad K

    w1p = jnp.pad(w1.astype(jnp.bfloat16), ((0, F_PAD - IN_F), (0, 0)))
    b1p = b1.reshape(1, HID).astype(jnp.float32)
    w2p = jnp.pad(w2.astype(jnp.bfloat16), ((0, 0), (0, C_PAD - NCLS)))
    b2p = jnp.pad(b2.reshape(1, NCLS).astype(jnp.float32),
                  ((0, 0), (0, C_PAD - NCLS)), constant_values=-1e30)

    if tile_b is None:
        tile_b = _pick_tile_b(B)
    B_pad = _round_up(B, tile_b)
    if B_pad != B:
        x2d = jnp.pad(x2d, ((0, B_pad - B), (0, 0)))                # zero-pad batch

    grid = (B_pad // tile_b,)

    cost = pl.CostEstimate(
        flops=2 * B_pad * (F_PAD * HID + HID * C_PAD),
        transcendentals=B_pad * C_PAD,                              # exp
        bytes_accessed=(x2d.size * 2 + w1p.size * 2 + w2p.size * 2
                        + (b1p.size + b2p.size) * 4 + B_pad * C_PAD * 4),
    )

    out = pl.pallas_call(
        net_kernel,
        out_shape=jax.ShapeDtypeStruct((B_pad, C_PAD), jnp.float32),
        grid_spec=pltpu.PrefetchScalarGridSpec(
            num_scalar_prefetch=0,
            grid=grid,
            in_specs=[
                pl.BlockSpec((tile_b, F_PAD), lambda i: (i, 0)),    # x (streamed)
                pl.BlockSpec((F_PAD, HID), lambda i: (0, 0)),       # w1 (resident)
                pl.BlockSpec((1, HID), lambda i: (0, 0)),           # b1
                pl.BlockSpec((HID, C_PAD), lambda i: (0, 0)),       # w2
                pl.BlockSpec((1, C_PAD), lambda i: (0, 0)),         # b2
            ],
            out_specs=pl.BlockSpec((tile_b, C_PAD), lambda i: (i, 0)),
        ),
        compiler_params=pltpu.CompilerParams(
            dimension_semantics=("parallel",),
        ),
        cost_estimate=cost,
    )(x2d, w1p, b1p, w2p, b2p)

    return out[:B, :NCLS]


def init_params(key):
    """Deterministic init mirroring nn.Linear shapes (weights stored transposed)."""
    k1, k2, k3, k4 = jax.random.split(key, 4)
    lim1 = 1.0 / jnp.sqrt(784.0)
    lim2 = 1.0 / jnp.sqrt(128.0)
    w1 = jax.random.uniform(k1, (IN_F, HID), jnp.float32, -lim1, lim1)
    b1 = jax.random.uniform(k2, (HID,), jnp.float32, -lim1, lim1)
    w2 = jax.random.uniform(k3, (HID, NCLS), jnp.float32, -lim2, lim2)
    b2 = jax.random.uniform(k4, (NCLS,), jnp.float32, -lim2, lim2)
    return w1, b1, w2, b2


if __name__ == "__main__":
    key = jax.random.PRNGKey(0)
    kx, kp = jax.random.split(key)

    B = 8  # small demo batch
    x = jax.random.normal(kx, (B, 1, 28, 28), jnp.float32)  # NCHW like FashionMNIST
    w1, b1, w2, b2 = init_params(kp)

    out = net_forward(x, w1, b1, w2, b2)
    out = jax.block_until_ready(out)

    # sanity: f32 reference in plain JAX (kernel uses bf16 matmul operands,
    # so compare with a bf16-level tolerance)
    x2d = x.reshape(B, IN_F)
    h = jnp.maximum(x2d @ w1 + b1, 0.0)
    ref = jax.nn.softmax(h @ w2 + b2, axis=1)
    assert out.shape == (B, NCLS)
    assert jnp.allclose(out, ref, atol=1e-2, rtol=1e-2)
    assert jnp.allclose(jnp.sum(out, axis=1), 1.0, atol=1e-2)

    print("KERNEL_OK")
</pallas_src>

<mosaic_0001>
module attributes {stable_mosaic.version = 11 : i64} {
  func.func @net_kernel(%arg0: i32, %arg1: memref<8x896xbf16, #tpu.memory_space<vmem>>, %arg2: memref<896x128xbf16, #tpu.memory_space<vmem>>, %arg3: memref<1x128xf32, #tpu.memory_space<vmem>>, %arg4: memref<128x128xbf16, #tpu.memory_space<vmem>>, %arg5: memref<1x128xf32, #tpu.memory_space<vmem>>, %arg6: memref<8x128xf32, #tpu.memory_space<vmem>>) attributes {dimension_semantics = [#tpu.dimension_semantics<parallel>], iteration_bounds = array<i64: 1>, scalar_prefetch = 0 : i64, scratch_operands = 0 : i64, tpu.core_type = #tpu.core_type<tc>, window_params = [{transform_indices = @transform_0, window_bounds = array<i64: 8, 896>}, {pipeline_mode = #tpu.pipeline_mode<synchronous>, transform_indices = @transform_1, window_bounds = array<i64: 896, 128>}, {pipeline_mode = #tpu.pipeline_mode<synchronous>, transform_indices = @transform_2, window_bounds = array<i64: 1, 128>}, {pipeline_mode = #tpu.pipeline_mode<synchronous>, transform_indices = @transform_3, window_bounds = array<i64: 128, 128>}, {pipeline_mode = #tpu.pipeline_mode<synchronous>, transform_indices = @transform_4, window_bounds = array<i64: 1, 128>}, {transform_indices = @transform_5, window_bounds = array<i64: 8, 128>}]} {
    %c0 = arith.constant 0 : index
    %c0_0 = arith.constant 0 : index
    %0 = vector.load %arg1[%c0, %c0_0] : memref<8x896xbf16, #tpu.memory_space<vmem>>, vector<8x896xbf16>
    %c0_1 = arith.constant 0 : index
    %c0_2 = arith.constant 0 : index
    %1 = vector.load %arg2[%c0_1, %c0_2] : memref<896x128xbf16, #tpu.memory_space<vmem>>, vector<896x128xbf16>
    %cst = arith.constant dense<0.000000e+00> : vector<8x128xf32>
    %2 = tpu.matmul %0, %1, %cst {dimension_numbers = #tpu.dot_dimension_numbers<[1], [0], [0], [1], [0, 0, 1, 1], [], []>} : vector<8x896xbf16>, vector<896x128xbf16>, vector<8x128xf32> -> vector<8x128xf32>
    %c0_3 = arith.constant 0 : index
    %c0_4 = arith.constant 0 : index
    %3 = vector.load %arg3[%c0_3, %c0_4] : memref<1x128xf32, #tpu.memory_space<vmem>>, vector<1x128xf32>
    %4 = vector.broadcast %3 : vector<1x128xf32> to vector<8x128xf32>
    %5 = arith.addf %2, %4 : vector<8x128xf32>
    %cst_5 = arith.constant 0.000000e+00 : f32
    %6 = vector.broadcast %cst_5 : f32 to vector<8x128xf32>
    %7 = arith.maximumf %5, %6 : vector<8x128xf32>
    %8 = arith.truncf %7 : vector<8x128xf32> to vector<8x128xbf16>
    %c0_6 = arith.constant 0 : index
    %c0_7 = arith.constant 0 : index
    %9 = vector.load %arg4[%c0_6, %c0_7] : memref<128x128xbf16, #tpu.memory_space<vmem>>, vector<128x128xbf16>
    %cst_8 = arith.constant dense<0.000000e+00> : vector<8x128xf32>
    %10 = tpu.matmul %8, %9, %cst_8 {dimension_numbers = #tpu.dot_dimension_numbers<[1], [0], [0], [1], [0, 0, 1, 1], [], []>} : vector<8x128xbf16>, vector<128x128xbf16>, vector<8x128xf32> -> vector<8x128xf32>
    %c0_9 = arith.constant 0 : index
    %c0_10 = arith.constant 0 : index
    %11 = vector.load %arg5[%c0_9, %c0_10] : memref<1x128xf32, #tpu.memory_space<vmem>>, vector<1x128xf32>
    %12 = vector.broadcast %11 : vector<1x128xf32> to vector<8x128xf32>
    %13 = arith.addf %10, %12 : vector<8x128xf32>
    %cst_11 = arith.constant dense<0xFF800000> : vector<8xf32>
    %14 = vector.multi_reduction <maximumf>, %13, %cst_11 [1] : vector<8x128xf32> to vector<8xf32>
    %15 = vector.shape_cast %14 : vector<8xf32> to vector<8x1xf32>
    %16 = vector.broadcast %15 : vector<8x1xf32> to vector<8x128xf32>
    %17 = arith.subf %13, %16 : vector<8x128xf32>
    %18 = math.exp %17 : vector<8x128xf32>
    %cst_12 = arith.constant dense<0.000000e+00> : vector<8xf32>
    %19 = vector.multi_reduction <add>, %18, %cst_12 [1] : vector<8x128xf32> to vector<8xf32>
    %20 = vector.shape_cast %19 : vector<8xf32> to vector<8x1xf32>
    %21 = tpu.reciprocal %20 {approx = true} : vector<8x1xf32> -> vector<8x1xf32>
    %22 = vector.broadcast %21 : vector<8x1xf32> to vector<8x128xf32>
    %23 = arith.mulf %18, %22 : vector<8x128xf32>
    %c0_13 = arith.constant 0 : index
    %c0_14 = arith.constant 0 : index
    %24 = vector.load %arg6[%c0_13, %c0_14] : memref<8x128xf32, #tpu.memory_space<vmem>>, vector<8x128xf32>
    tpu.vector_store %arg6[%c0_13, %c0_14], %23 {strides = array<i32>} : memref<8x128xf32, #tpu.memory_space<vmem>>, vector<8x128xf32>,
    return
  }
  func.func @transform_0(%arg0: i32) -> (i32, i32) {
    %c0_i32 = arith.constant 0 : i32
    %c0_i32_0 = arith.constant 0 : i32
    return %arg0, %c0_i32 : i32, i32
  }
  func.func @transform_1(%arg0: i32) -> (i32, i32) {
    %c0_i32 = arith.constant 0 : i32
    %c0_i32_0 = arith.constant 0 : i32
    %c0_i32_1 = arith.constant 0 : i32
    return %c0_i32, %c0_i32_0 : i32, i32
  }
  func.func @transform_2(%arg0: i32) -> (i32, i32) {
    %c0_i32 = arith.constant 0 : i32
    %c0_i32_0 = arith.constant 0 : i32
    %c0_i32_1 = arith.constant 0 : i32
    return %c0_i32, %c0_i32_0 : i32, i32
  }
  func.func @transform_3(%arg0: i32) -> (i32, i32) {
    %c0_i32 = arith.constant 0 : i32
    %c0_i32_0 = arith.constant 0 : i32
    %c0_i32_1 = arith.constant 0 : i32
    return %c0_i32, %c0_i32_0 : i32, i32
  }
  func.func @transform_4(%arg0: i32) -> (i32, i32) {
    %c0_i32 = arith.constant 0 : i32
    %c0_i32_0 = arith.constant 0 : i32
    %c0_i32_1 = arith.constant 0 : i32
    return %c0_i32, %c0_i32_0 : i32, i32
  }
  func.func @transform_5(%arg0: i32) -> (i32, i32) {
    %c0_i32 = arith.constant 0 : i32
    %c0_i32_0 = arith.constant 0 : i32
    return %arg0, %c0_i32 : i32, i32
  }
}

</mosaic_0001>

<bundles_post_ra>
// kernel: tpu_custom_call.1
= control target key start
LH: loop header
LB: loop body
LE: loop exit
PB: predicated region body
PF: predicated region fallthrough
CT: control target
= control target key end

     0   :  { %10 = vsyncpa [#allocation3], 0  ;;  %s1336_s0 = inlined_call_operand.hbm [shape: bf16[8,896], index: 0, kind: input, shape index: {}]   ;;  %s1337_s1 = inlined_call_operand.hbm [shape: bf16[896,128], index: 1, kind: input, shape index: {}]   ;;  %s1338_s2 = inlined_call_operand.vmem [shape: f32[1,128], index: 2, kind: input, shape index: {}]   ;;  %s1339_s3 = inlined_call_operand.hbm [shape: bf16[128,128], index: 3, kind: input, shape index: {}]   ;;  %s1340_s4 = inlined_call_operand.vmem [shape: f32[1,128], index: 4, kind: input, shape index: {}]   ;;  %s1341_s5 = inlined_call_operand.hbm [shape: f32[8,128], index: 5, kind: output, shape index: {}]  }
   0x1   :  { %11 = vsyncpa [#allocation6], 0 }
   0x2   :  { %12 = vsyncpa [#allocation4], 0  ;;  %s1218_s18 = smov [#allocation5]   ;;  %s1124_s22 = scalar_lea.hbm %s1337_s1, 7168 }
   0x3   :  { %s28_s19 = sshll.u32 %s1218_s18, 4  ;;  %p1125_p0 = scmp.ne.s32.totalorder %s1337_s1, %s1124_s22  ;;  %s29_s19 = int_to_ptr.vmem [resolvable:$true] %s28_s19 }
   0x4   :  { %p1128_p1 = scmp.lt.u32.totalorder %s1124_s22, %s1337_s1 }
   0x6   :  { %p1130_p2 = pnand %p1128_p1, %p1125_p0 }
   0x8   :  { %1133 = shalt.err (!%p1130_p2)
}
   0x9   :  { %s1134_s27 = scalar_lea.vmem %s29_s19, 7168  ;;  %p1139_p4 = scmp.lt.s32.totalorder %s29_s19, %s29_s19 }
   0xa   :  { %p1135_p3 = scmp.ne.s32.totalorder %s29_s19, %s1134_s27  ;;  %p1140_p5 = scmp.lt.s32.totalorder %s1134_s27, %s1134_s27 }
   0xc   :  { %p1141_p6 = por %p1140_p5, %p1139_p4 }
   0xe   :  { %p1142_p7 = pnand %p1141_p6, %p1135_p3 }
  0x10   :  { %1145 = shalt.err (!%p1142_p7)
}
  0x11   :  { %s1219_s28 = smov 64   ;;  %s1220_s29 = smov 4  }
  0x12   :  { %34 = dma.hbm_to_vmem [thread:$0]  %s1337_s1, 7168, %s29_s19, [#allocation6], %s1219_s28, %s1219_s28, %s1220_s29  }
  0x13   :  { %s1221_s7 = smov [#allocation2]   ;;  %s1222_s9 = smov [#allocation7]  }
  0x14   :  { %s19_s8 = sshll.u32 %s1221_s7, 4  ;;  %s42_s10 = sshll.u32 %s1222_s9, 4  ;;  %s20_s8 = int_to_ptr.vmem [resolvable:$true] %s19_s8  ;;  %s43_s10 = int_to_ptr.vmem [resolvable:$true] %s42_s10 }
  0x15   :  { %s1146_s13 = scalar_lea.hbm %s1336_s0, 448 }
  0x16   :  { %p1147_p8 = scmp.ne.s32.totalorder %s1336_s0, %s1146_s13  ;;  %p1150_p9 = scmp.lt.u32.totalorder %s1146_s13, %s1336_s0 }
  0x18   :  { %p1152_p10 = pnand %p1150_p9, %p1147_p8 }
  0x1a   :  { %1155 = shalt.err (!%p1152_p10)
}
  0x1b   :  { %s1156_s1 = scalar_lea.vmem %s20_s8, 448  ;;  %p1161_p12 = scmp.lt.s32.totalorder %s20_s8, %s20_s8 }
  0x1c   :  { %p1157_p11 = scmp.ne.s32.totalorder %s20_s8, %s1156_s1  ;;  %p1162_p13 = scmp.lt.s32.totalorder %s1156_s1, %s1156_s1 }
  0x1e   :  { %p1163_p0 = por %p1162_p13, %p1161_p12 }
  0x20   :  { %p1164_p1 = pnand %p1163_p0, %p1157_p11 }
  0x22   :  { %1167 = shalt.err (!%p1164_p1)
}
  0x23   :  { %22 = dma.hbm_to_vmem [thread:$0]  %s1336_s0, 448, %s20_s8, [#allocation3]  }
  0x24   :  { %s1168_s22 = scalar_lea.hbm %s1339_s3, 1024 }
  0x25   :  { %p1169_p2 = scmp.ne.s32.totalorder %s1339_s3, %s1168_s22  ;;  %p1172_p3 = scmp.lt.u32.totalorder %s1168_s22, %s1339_s3 }
  0x27   :  { %p1174_p4 = pnand %p1172_p3, %p1169_p2 }
  0x29   :  { %1177 = shalt.err (!%p1174_p4)
}
  0x2a   :  { %s1178_s27 = scalar_lea.vmem %s43_s10, 1024  ;;  %p1183_p6 = scmp.lt.s32.totalorder %s43_s10, %s43_s10 }
  0x2b   :  { %p1179_p5 = scmp.ne.s32.totalorder %s43_s10, %s1178_s27  ;;  %p1184_p7 = scmp.lt.s32.totalorder %s1178_s27, %s1178_s27 }
  0x2d   :  { %p1185_p8 = por %p1184_p7, %p1183_p6 }
  0x2f   :  { %p1186_p9 = pnand %p1185_p8, %p1179_p5 }
  0x31   :  { %1189 = shalt.err (!%p1186_p9)
}
  0x32   :  { %48 = dma.hbm_to_vmem [thread:$0]  %s1339_s3, 1024, %s43_s10, [#allocation6], %s1219_s28, %s1219_s28, %s1220_s29  }
  0x33   :  { %1212 = dma.done.wait [#allocation3], 448  }
  0x34   :  { %1213 = vsyncadd [#allocation3], 4294966848 }
  0x35   :  { %1214 = dma.done.wait [#allocation6], 8192  }
  0x36   :  { %1215 = vsyncadd [#allocation6], 4294959104  ;;  %v1049_v0 = vld [vmem:[#allocation5 + $0x40] sm:$0xff]   ;;  %v1053_v4 = vld [vmem:[#allocation5 + $0x48] sm:$0xff]   ;;  %v1223_v42 = vmov 0.0   ;;  %vm1224_vm0 = vmmov 0  }
  0x37   :  { %v1050_v1 = vld [vmem:[#allocation5] sm:$0xff]   ;;  %917 = vmatprep.subr.bf16.mxu0 %v1049_v0  ;;  %v1054_v5 = vld [vmem:[#allocation5 + $0x8] sm:$0xff]   ;;  %v1057_v8 = vld [vmem:[#allocation5 + $0x50] sm:$0xff]   ;;  %s1225_s6 = smov [#allocation8]  }
  0x38   :  { %v1051_v2 = vld [vmem:[#allocation5 + $0xc0] sm:$0xff]   ;;  %918 = vmatpush3.bf16.msra.mxu0 %v1050_v1  ;;  %v1055_v6 = vld [vmem:[#allocation5 + $0xc8] sm:$0xff]   ;;  %v1058_v9 = vld [vmem:[#allocation5 + $0x10] sm:$0xff]   ;;  %s834_s7 = sshll.u32 %s1225_s6, 4  ;;  %s835_s7 = int_to_ptr.vmem [resolvable:$true] %s834_s7 }
  0x39   :  { %v1052_v3 = vld [vmem:[#allocation5 + $0x80] sm:$0xff]   ;;  %939 = vmatprep.subr.bf16.mxu1 %v1051_v2  ;;  %919 = vmatprep.subr.bf16.mxu0 %v1053_v4  ;;  %v1056_v7 = vld [vmem:[#allocation5 + $0x88] sm:$0xff]   ;;  %v1059_v10 = vld [vmem:[#allocation5 + $0xd0] sm:$0xff]   ;;  %p1195_p11 = scmp.lt.s32.totalorder %s835_s7, %s835_s7 }
  0x3a   :  { %940 = vmatpush3.bf16.msra.mxu1 %v1052_v3  ;;  %v1060_v11 = vld [vmem:[#allocation5 + $0x90] sm:$0xff]   ;;  %v1061_v12 = vld [vmem:[#allocation5 + $0x58] sm:$0xff]   ;;  %v1065_v16 = vld [vmem:[#allocation5 + $0x60] sm:$0xff]  }
  0x3b   :  { %941 = vmatprep.subr.bf16.mxu1 %v1055_v6  ;;  %v1062_v13 = vld [vmem:[#allocation5 + $0x18] sm:$0xff]   ;;  %v1066_v17 = vld [vmem:[#allocation5 + $0x20] sm:$0xff]   ;;  %v1069_v20 = vld [vmem:[#allocation5 + $0x68] sm:$0xff]  }
  0x3c   :  { %920 = vmatpush3.bf16.msra.mxu0 %v1054_v5  ;;  %v1063_v14 = vld [vmem:[#allocation5 + $0xd8] sm:$0xff]   ;;  %v1067_v18 = vld [vmem:[#allocation5 + $0xe0] sm:$0xff]   ;;  %v1070_v21 = vld [vmem:[#allocation5 + $0x28] sm:$0xff]  }
  0x3d   :  { %921 = vmatprep.subr.bf16.mxu0 %v1057_v8  ;;  %v1064_v15 = vld [vmem:[#allocation5 + $0x98] sm:$0xff]   ;;  %v1068_v19 = vld [vmem:[#allocation5 + $0xa0] sm:$0xff]   ;;  %v1071_v22 = vld [vmem:[#allocation5 + $0xe8] sm:$0xff]  }
  0x3e   :  { %942 = vmatpush3.bf16.msra.mxu1 %v1056_v7  ;;  %v1072_v23 = vld [vmem:[#allocation5 + $0xa8] sm:$0xff]   ;;  %v1073_v24 = vld [vmem:[#allocation5 + $0x70] sm:$0xff]   ;;  %v1077_v28 = vld [vmem:[#allocation5 + $0x78] sm:$0xff]  }
  0x3f   :  { %943 = vmatprep.subr.bf16.mxu1 %v1059_v10  ;;  %v1074_v25 = vld [vmem:[#allocation5 + $0x30] sm:$0xff]   ;;  %v1078_v29 = vld [vmem:[#allocation5 + $0x38] sm:$0xff]   ;;  %v61_v31 = vld [vmem:[#allocation2] sm:$0xff] }
  0x40   :  { %922 = vmatpush3.bf16.msra.mxu0 %v1058_v9  ;;  %v1075_v26 = vld [vmem:[#allocation5 + $0xf0] sm:$0xff]   ;;  %v1079_v30 = vld [vmem:[#allocation5 + $0xf8] sm:$0xff]   ;;  %v845_v32 = vcombine.low %v61_v31, %v61_v31  ;;  %v846_v33 = vcombine.high %v61_v31, %v61_v31  ;;  %v1083_v35 = vld [vmem:[#allocation5 + $0x140] sm:$0xff]  }
  0x41   :  { %923 = vmatprep.subr.bf16.mxu0 %v1061_v12  ;;  %v1076_v27 = vld [vmem:[#allocation5 + $0xb0] sm:$0xff]   ;;  %v1082_v34 = vld [vmem:[#allocation5 + $0xb8] sm:$0xff]   ;;  %v1086_v39 = vld [vmem:[#allocation5 + $0x100] sm:$0xff]  }
  0x42   :  { %944 = vmatpush3.bf16.msra.mxu1 %v1060_v11  ;;  %v62_v36 = vld [vmem:[#allocation2 + $0x8] sm:$0xff]  ;;  %577 = vmatprep.mubr.bf16.mxu0 %v846_v33  ;;  %v1087_v40 = vld [vmem:[#allocation5 + $0x180] sm:$0xff]   ;;  %v1094_v48 = vld [vmem:[#allocation5 + $0x158] sm:$0xff]  }
  0x43   :  { %945 = vmatprep.subr.bf16.mxu1 %v1063_v14  ;;  %v847_v37 = vcombine.low %v62_v36, %v62_v36  ;;  %v848_v38 = vcombine.high %v62_v36, %v62_v36  ;;  %v1088_v41 = vld [vmem:[#allocation5 + $0x148] sm:$0xff]   ;;  %v1091_v45 = vld [vmem:[#allocation5 + $0x150] sm:$0xff]   ;;  %v1095_v49 = vld [vmem:[#allocation5 + $0x118] sm:$0xff]  }
  0x44   :  { %924 = vmatpush3.bf16.msra.mxu0 %v1062_v13  ;;  %v1089_v43 = vld [vmem:[#allocation5 + $0x108] sm:$0xff]   ;;  %v1092_v46 = vld [vmem:[#allocation5 + $0x110] sm:$0xff]   ;;  %v1097_v50 = vld [vmem:[#allocation5 + $0x160] sm:$0xff]  }
  0x45   :  { %925 = vmatprep.subr.bf16.mxu0 %v1065_v16  ;;  %617 = vmatprep.mubr.bf16.mxu1 %v848_v38  ;;  %v1090_v44 = vld [vmem:[#allocation5 + $0x188] sm:$0xff]   ;;  %v1093_v47 = vld [vmem:[#allocation5 + $0x190] sm:$0xff]   ;;  %v1096_v51 = vld [vmem:[#allocation5 + $0x198] sm:$0xff]  }
  0x46   :  { %946 = vmatpush3.bf16.msra.mxu1 %v1064_v15  ;;  %v1098_v52 = vld [vmem:[#allocation5 + $0x120] sm:$0xff]   ;;  %v1100_v53 = vld [vmem:[#allocation5 + $0x168] sm:$0xff]   ;;  %v1103_v56 = vld [vmem:[#allocation5 + $0x170] sm:$0xff]  }
  0x47   :  { %947 = vmatprep.subr.bf16.mxu1 %v1067_v18  ;;  %v1099_v54 = vld [vmem:[#allocation5 + $0x1a0] sm:$0xff]   ;;  %v1101_v55 = vld [vmem:[#allocation5 + $0x128] sm:$0xff]   ;;  %v1104_v58 = vld [vmem:[#allocation5 + $0x130] sm:$0xff]  }
  0x48   :  { %926 = vmatpush3.bf16.msra.mxu0 %v1066_v17  ;;  %v1102_v57 = vld [vmem:[#allocation5 + $0x1a8] sm:$0xff]   ;;  %v63_v59 = vld [vmem:[#allocation2 + $0x10] sm:$0xff]  ;;  %v1111_v2 = vld [vmem:[#allocation2 + $0x18] ss:$0 sps:$4 sm:$0xff]  }
  0x49   :  { %927 = vmatprep.subr.bf16.mxu0 %v1069_v20  ;;  %v1105_v60 = vld [vmem:[#allocation5 + $0x1b0] sm:$0xff]   ;;  %v850_v61 = vcombine.high %v63_v59, %v63_v59  ;;  %v1106_v62 = vld [vmem:[#allocation5 + $0x178] sm:$0xff]   ;;  %v849_v1 = vcombine.low %v63_v59, %v63_v59  ;;  %v1112_v3 = vld [vmem:[#allocation7] sm:$0xff]  }
  0x4a   :  { %948 = vmatpush3.bf16.msra.mxu1 %v1068_v19  ;;  %v1107_v63 = vld [vmem:[#allocation5 + $0x138] sm:$0xff]   ;;  %v1113_v4 = vld [vmem:[#allocation7 + $0x8] sm:$0xff]   ;;  %v1114_v5 = vld [vmem:[#allocation7 + $0x10] sm:$0xff]  }
  0x4b   :  { %949 = vmatprep.subr.bf16.mxu1 %v1071_v22  ;;  %v1110_v0 = vld [vmem:[#allocation5 + $0x1b8] sm:$0xff]   ;;  %v1116_v7 = vld [vmem:[#allocation7 + $0x20] sm:$0xff]   ;;  %v1117_v8 = vld [vmem:[#allocation7 + $0x28] sm:$0xff]  }
  0x4c   :  { %928 = vmatpush3.bf16.msra.mxu0 %v1070_v21  ;;  %v1115_v6 = vld [vmem:[#allocation7 + $0x18] sm:$0xff]   ;;  %v1118_v9 = vld [vmem:[#allocation7 + $0x30] sm:$0xff]   ;;  %v844_v12 = vld [vmem:[%s1338_s2] ss:$0 sm:$0xff] }
  0x4d   :  { %929 = vmatprep.subr.bf16.mxu0 %v1073_v24  ;;  %v1119_v10 = vld [vmem:[#allocation7 + $0x38] sm:$0xff]  }
  0x4e   :  { %950 = vmatpush3.bf16.msra.mxu1 %v1072_v23 }
  0x4f   :  { %951 = vmatprep.subr.bf16.mxu1 %v1075_v26 }
  0x50   :  { %930 = vmatpush3.bf16.msra.mxu0 %v1074_v25 }
  0x51   :  { %931 = vmatprep.subr.bf16.mxu0 %v1077_v28 }
  0x52   :  { %952 = vmatpush3.bf16.msra.mxu1 %v1076_v27 }
  0x53   :  { %953 = vmatprep.subr.bf16.mxu1 %v1079_v30 }
  0x54   :  { %932 = vmatpush3.bf16.msra.mxu0 %v1078_v29 }
  0x55   :  { %961 = vmatprep.subr.bf16.mxu0 %v1083_v35 }
  0x56   :  { %954 = vmatpush3.bf16.msra.mxu1 %v1082_v34 }
  0x57   :  { %578 = vmatmul.mubr.bf16.vlgmr.msra.gmra.mrb[0].mxu0 %v845_v32  ;;  %1001 = vmatprep.subr.bf16.mxu1 %v1223_v42 }
  0x58   :  { %962 = vmatpush3.bf16.msra.mxu0 %v1086_v39  ;;  %657 = vmatprep.mubr.bf16.mxu0 %v850_v61 }
  0x59   :  { %618 = vmatmul.mubr.bf16.vlgmr.msra.gmra.mrb[0].mxu1 %v847_v37  ;;  %963 = vmatprep.subr.bf16.mxu0 %v1088_v41  ;;  %v908_v37 = vld [vmem:[%s1340_s4] ss:$0 sm:$0xff]  ;;  %s1190_s4 = scalar_lea.vmem %s835_s7, 128 }
  0x5a   :  { %1002 = vmatpush3.bf16.msra.mxu1 %v1087_v40  ;;  %1017 = vmatprep.mubr.msk.bf16.mxu1 %vm1224_vm0, %v1223_v42  ;;  %p1191_p10 = scmp.ne.s32.totalorder %s835_s7, %s1190_s4  ;;  %p1196_p12 = scmp.lt.s32.totalorder %s1190_s4, %s1190_s4 }
  0x5b   :  { %1003 = vmatprep.subr.bf16.mxu1 %v1223_v42 }
  0x5c   :  { %964 = vmatpush3.bf16.msra.mxu0 %v1089_v43  ;;  %p1197_p13 = por %p1196_p12, %p1195_p11 }
  0x5d   :  { %965 = vmatprep.subr.bf16.mxu0 %v1091_v45 }
  0x5e   :  { %1004 = vmatpush3.bf16.msra.mxu1 %v1090_v44  ;;  %p1198_p0 = pnand %p1197_p13, %p1191_p10 }
  0x5f   :  { %1005 = vmatprep.subr.bf16.mxu1 %v1223_v42 }
  0x60   :  { %966 = vmatpush3.bf16.msra.mxu0 %v1092_v46 }
  0x61   :  { %967 = vmatprep.subr.bf16.mxu0 %v1094_v48 }
  0x62   :  { %1006 = vmatpush3.bf16.msra.mxu1 %v1093_v47 }
  0x63   :  { %1007 = vmatprep.subr.bf16.mxu1 %v1223_v42 }
  0x64   :  { %968 = vmatpush3.bf16.msra.mxu0 %v1095_v49 }
  0x65   :  { %969 = vmatprep.subr.bf16.mxu0 %v1097_v50 }
  0x66   :  { %1008 = vmatpush3.bf16.msra.mxu1 %v1096_v51 }
  0x67   :  { %1009 = vmatprep.subr.bf16.mxu1 %v1223_v42 }
  0x68   :  { %970 = vmatpush3.bf16.msra.mxu0 %v1098_v52 }
  0x69   :  { %971 = vmatprep.subr.bf16.mxu0 %v1100_v53 }
  0x6a   :  { %1010 = vmatpush3.bf16.msra.mxu1 %v1099_v54 }
  0x6b   :  { %1011 = vmatprep.subr.bf16.mxu1 %v1223_v42 }
  0x6c   :  { %972 = vmatpush3.bf16.msra.mxu0 %v1101_v55 }
  0x6d   :  { %973 = vmatprep.subr.bf16.mxu0 %v1103_v56 }
  0x6e   :  { %1012 = vmatpush3.bf16.msra.mxu1 %v1102_v57 }
  0x6f   :  { %1013 = vmatprep.subr.bf16.mxu1 %v1223_v42 }
  0x70   :  { %974 = vmatpush3.bf16.msra.mxu0 %v1104_v58 }
  0x71   :  { %975 = vmatprep.subr.bf16.mxu0 %v1106_v62 }
  0x72   :  { %1014 = vmatpush3.bf16.msra.mxu1 %v1105_v60 }
  0x73   :  { %1015 = vmatprep.subr.bf16.mxu1 %v1223_v42 }
  0x74   :  { %976 = vmatpush3.bf16.msra.mxu0 %v1107_v63 }
  0x75   :  { %1021 = vmatprep.subr.bf16.mxu0 %v1223_v42 }
  0x76   :  { %1016 = vmatpush3.bf16.msra.mxu1 %v1110_v0 }
  0x77   :  { %658 = vmatmul.mubr.bf16.vlgmr.msra.gmra.mrb[4].mxu0 %v849_v1 }
  0x78   :  { %1037 = vmatprep.mubr.msk.bf16.mxu0 %vm1224_vm0, %v1223_v42  ;;  %1022 = vmatpush3.bf16.msra.mxu0 %v1112_v3 }
  0x79   :  { %1018 = vmatmul.mubr.bf16.vlgmr.msra.gmra.mrb[4].mxu1 %v1111_v2  ;;  %1023 = vmatprep.subr.bf16.mxu0 %v1223_v42 }
  0x7c   :  { %1024 = vmatpush3.bf16.msra.mxu0 %v1113_v4 }
  0x7d   :  { %1025 = vmatprep.subr.bf16.mxu0 %v1223_v42 }
  0x80   :  { %1026 = vmatpush3.bf16.msra.mxu0 %v1114_v5 }
  0x81   :  { %1027 = vmatprep.subr.bf16.mxu0 %v1223_v42 }
  0x84   :  { %1028 = vmatpush3.bf16.msra.mxu0 %v1115_v6 }
  0x85   :  { %1029 = vmatprep.subr.bf16.mxu0 %v1223_v42 }
  0x88   :  { %1030 = vmatpush3.bf16.msra.mxu0 %v1116_v7 }
  0x89   :  { %1031 = vmatprep.subr.bf16.mxu0 %v1223_v42 }
  0x8c   :  { %1032 = vmatpush3.bf16.msra.mxu0 %v1117_v8 }
  0x8d   :  { %1033 = vmatprep.subr.bf16.mxu0 %v1223_v42 }
  0x90   :  { %1034 = vmatpush3.bf16.msra.mxu0 %v1118_v9 }
  0x91   :  { %1035 = vmatprep.subr.bf16.mxu0 %v1223_v42 }
  0x94   :  { %1036 = vmatpush3.bf16.msra.mxu0 %v1119_v10 }
 0x12a   :  { %v933_v11 = vpop.f32.mrb[0].mxu0 }
 0x12b   :  { %v934_v13 = vpop.f32.mrb[1].mxu0 }
 0x12c   :  { %v935_v14 = vadd.f32 %v934_v13, %v933_v11  ;;  %v936_v15 = vpop.f32.mrb[2].mxu0  ;;  %v955_v16 = vpop.f32.mrb[0].mxu1 }
 0x12d   :  { %v937_v17 = vpop.f32.mrb[3].mxu0  ;;  %v956_v18 = vpop.f32.mrb[1].mxu1 }
 0x12e   :  { %v580_v19 = vadd.f32 %v935_v14, %v844_v12  ;;  %v957_v20 = vadd.f32 %v956_v18, %v955_v16  ;;  %v958_v21 = vpop.f32.mrb[2].mxu1 }
 0x12f   :  { %v959_v22 = vpop.f32.mrb[3].mxu1 }
 0x130   :  { %v620_v23 = vadd.f32 %v957_v20, %v580_v19 }
 0x14a   :  { %v977_v24 = vpop.f32.mrb[4].mxu0 }
 0x14b   :  { %v978_v25 = vpop.f32.mrb[5].mxu0 }
 0x14c   :  { %v979_v26 = vadd.f32 %v978_v25, %v977_v24  ;;  %v980_v27 = vpop.f32.mrb[6].mxu0  ;;  %v699_v28 = vpop.f32.mrb[4].mxu1 }
 0x14d   :  { %v981_v29 = vpop.f32.mrb[7].mxu0  ;;  %v1019_v30 = vpop.f32.mrb[5].mxu1 }
 0x14e   :  { %v660_v31 = vadd.f32 %v979_v26, %v620_v23  ;;  %v702_v32 = vpop.f32.mrb[6].mxu1 }
 0x14f   :  { %v1020_v33 = vpop.f32.mrb[7].mxu1 }
 0x150   :  { %v700_v34 = vadd.f32 %v699_v28, %v660_v31 }
 0x152   :  { %v705_v35 = vmax.f32 %v700_v34, 0.0 }
 0x154   :  { %v706_v36 = vpack.c.bf16 %v705_v35, %v705_v35 }
 0x156   :  { %1038 = vmatmul.mubr.bf16.vlgmr.msra.gmra.mrb[8].mxu0 %v706_v36 }
 0x229   :  { %v812_v38 = vpop.f32.mrb[8].mxu0 }
 0x22a   :  { %v813_v39 = vadd.f32 %v908_v37, %v812_v38  ;;  %v1039_v40 = vpop.f32.mrb[9].mxu0 }
 0x22b   :  { %v815_v41 = vpop.f32.mrb[10].mxu0 }
 0x22c   :  { %818 = vmax.xlane.f32.xlu0 %v813_v39  ;;  %v1040_v42 = vpop.f32.mrb[11].mxu0 }
 0x2b9   :  { %v819_v43 = vpop.xlane.xlu0 %818 }
 0x2ba   :  { %v820_v44 = vsub.f32 %v813_v39, %v819_v43 }
 0x2bc   :  { %v821_v45 = vmul.f32 1.442695, %v820_v44 }
 0x2be   :  { %1120 = vpow2.f32 %v821_v45 }
 0x2c8   :  { %v1121_v46 = vpop.eup %1120 }
 0x2c9   :  { %823 = vadd.xlane.f32.xlu0 %v1121_v46 }
 0x356   :  { %v824_v47 = vpop.xlane.xlu0 %823 }
 0x357   :  { %1122 = vrcp.f32 %v824_v47 }
 0x361   :  { %v1123_v48 = vpop.eup %1122 }
 0x362   :  { %v826_v49 = vmul.f32 %v1123_v48, %v1121_v46 }
 0x364   :  { %827 = vst [vmem:[#allocation8] sm:$0xff] %v826_v49 }
 0x365   :  { %1201 = shalt.err (!%p1198_p0)
}
 0x366   :  { %s1202_s10 = scalar_lea.hbm %s1341_s5, 128 }
 0x367   :  { %p1203_p1 = scmp.ne.s32.totalorder %s1341_s5, %s1202_s10  ;;  %p1206_p2 = scmp.lt.u32.totalorder %s1202_s10, %s1341_s5 }
 0x369   :  { %p1208_p3 = pnand %p1206_p2, %p1203_p1 }
 0x36b   :  { %1211 = shalt.err (!%p1208_p3)
}
 0x36c   :  { %837 = dma.vmem_to_hbm [thread:$0]  %s835_s7, 128, %s1341_s5, [#allocation4]  }
 0x36d   :  { %1216 = dma.done.wait [#allocation4], 128  }
 0x36e   :  { %1217 = vsyncadd [#allocation4], 4294967168 }
 0x36f   :  { %841 = vsyncpa [#allocation3], 1 }
 0x370   :  { %842 = vsyncpa [#allocation6], 1 }
 0x371   :  { %843 = vsyncpa [#allocation4], 1 }

</bundles_post_ra>
